<compile_context>
chip_gen: v5e
topology: v5e:2x2
jax: 0.10.0
libtpu: 0.0.40
codegen_flags: <defaults>
</compile_context>

<pallas_src>
import math

import jax
import jax.numpy as jnp
from jax import lax
from jax.experimental import pallas as pl
from jax.experimental.pallas import tpu as pltpu

SOS_TOKEN = 0
EOS_TOKEN = 1  # also the embedding padding_idx (row zeroed at init)


# ----------------------------------------------------------------------------
# Pallas kernel 1: row-tiled dense linear  y = x @ W + b
# Used for the hoisted LSTM input projections and the fused key/value proj.
# ----------------------------------------------------------------------------
def _linear_kernel(x_ref, w_ref, b_ref, o_ref):
    o_ref[...] = (jnp.dot(x_ref[...], w_ref[...],
                          preferred_element_type=jnp.float32) + b_ref[...])


def linear(x, w, b, block_m=256):
    M, K = x.shape
    N = w.shape[1]
    bm = M if M <= block_m else block_m
    n_blk = (M + bm - 1) // bm
    Mp = n_blk * bm
    if Mp != M:
        x = jnp.pad(x, ((0, Mp - M), (0, 0)))
    out = pl.pallas_call(
        _linear_kernel,
        out_shape=jax.ShapeDtypeStruct((Mp, N), jnp.float32),
        grid_spec=pltpu.PrefetchScalarGridSpec(
            num_scalar_prefetch=0,
            grid=(n_blk,),
            in_specs=[
                pl.BlockSpec((bm, K), lambda i: (i, 0)),
                pl.BlockSpec((K, N), lambda i: (0, 0)),
                pl.BlockSpec((1, N), lambda i: (0, 0)),
            ],
            out_specs=pl.BlockSpec((bm, N), lambda i: (i, 0)),
        ),
        compiler_params=pltpu.CompilerParams(
            dimension_semantics=("parallel",)),
    )(x, w, b)
    return out[:M] if Mp != M else out


# ----------------------------------------------------------------------------
# Pallas kernel 2: bidirectional LSTM recurrence over precomputed input gates.
#   grid=(2, nT): axis 0 = direction (parallel), axis 1 = time chunks.
#   Input gates gx already contain x @ Wx + b for both directions (lane halves
#   [0:4H] = forward, [4H:8H] = backward).  Backward time order is handled by
#   the index_map (chunk reversal) + a reversed static unroll inside the
#   kernel.  Per-sequence lengths mask the carried state and zero the outputs
#   (pad_packed semantics).
# ----------------------------------------------------------------------------
def _bilstm_rec_kernel(lens_ref, gx_ref, wh_ref, out_ref, h_sc, c_sc):
    d = pl.program_id(0)
    t = pl.program_id(1)
    nT = pl.num_programs(1)
    Tc = gx_ref.shape[0]
    H = h_sc.shape[-1]

    @pl.when(t == 0)
    def _():
        h_sc[...] = jnp.zeros_like(h_sc)
        c_sc[...] = jnp.zeros_like(c_sc)

    wh = wh_ref[0]                      # (H, 4H), direction chosen by index_map
    lens = lens_ref[...]                # (B, 1) int32

    def run(order, base, col):
        # order: static python iteration order inside the chunk
        # base : traced scalar, absolute time of local index 0 of this chunk
        # col  : static lane offset selecting this direction's gates
        for j in order:
            gates = (gx_ref[j, :, col:col + 4 * H]
                     + jnp.dot(h_sc[...], wh,
                               preferred_element_type=jnp.float32))
            i_g = jax.nn.sigmoid(gates[:, 0:H])
            f_g = jax.nn.sigmoid(gates[:, H:2 * H])
            g_g = jnp.tanh(gates[:, 2 * H:3 * H])
            o_g = jax.nn.sigmoid(gates[:, 3 * H:4 * H])
            c_new = f_g * c_sc[...] + i_g * g_g
            h_new = o_g * jnp.tanh(c_new)
            valid = lens > (base + j)                       # (B, 1) bool
            c_sc[...] = jnp.where(valid, c_new, c_sc[...])
            h_sc[...] = jnp.where(valid, h_new, h_sc[...])
            out_ref[0, j] = jnp.where(valid, h_new, 0.0)

    @pl.when(d == 0)
    def _():
        run(range(Tc), t * Tc, 0)

    @pl.when(d == 1)
    def _():
        run(range(Tc - 1, -1, -1), (nT - 1 - t) * Tc, 4 * H)


def bilstm_layer(p, x_tbf, lens):
    """x_tbf: (T, B, I) time-major.  Returns (T, B, 2H), padding zeroed."""
    T, B, I = x_tbf.shape
    H = p["wh"].shape[1]

    # Hoisted input projection for BOTH directions: one (T*B, I) @ (I, 8H).
    gx = linear(x_tbf.reshape(T * B, I), p["wx"], p["b"]).reshape(T, B, 8 * H)

    Tc = min(T, 8)
    nT = (T + Tc - 1) // Tc
    Tp = nT * Tc
    if Tp != T:
        gx = jnp.pad(gx, ((0, Tp - T), (0, 0), (0, 0)))
    lens2 = lens.reshape(B, 1).astype(jnp.int32)

    def t_blk(d, t):
        # forward: t   backward: nT-1-t   (pure index arithmetic, no gathers)
        return d * (nT - 1) + t - 2 * d * t

    out = pl.pallas_call(
        _bilstm_rec_kernel,
        out_shape=jax.ShapeDtypeStruct((2, Tp, B, H), jnp.float32),
        grid_spec=pltpu.PrefetchScalarGridSpec(
            num_scalar_prefetch=0,
            grid=(2, nT),
            in_specs=[
                pl.BlockSpec((B, 1), lambda d, t: (0, 0)),
                pl.BlockSpec((Tc, B, 8 * H), lambda d, t: (t_blk(d, t), 0, 0)),
                pl.BlockSpec((1, H, 4 * H), lambda d, t: (d, 0, 0)),
            ],
            out_specs=pl.BlockSpec((1, Tc, B, H),
                                   lambda d, t: (d, t_blk(d, t), 0, 0)),
            scratch_shapes=[pltpu.VMEM((B, H), jnp.float32),
                            pltpu.VMEM((B, H), jnp.float32)],
        ),
        compiler_params=pltpu.CompilerParams(
            dimension_semantics=("parallel", "arbitrary")),
    )(lens2, gx, p["wh"])
    if Tp != T:
        out = out[:, :T]
    return jnp.concatenate([out[0], out[1]], axis=-1)      # (T, B, 2H)


# ----------------------------------------------------------------------------
# Pallas kernel 3: the whole greedy decode loop in one call, grid=(max_steps,).
# Weights / embedding / key / value / mask stay resident in VMEM; decoder
# state is carried in VMEM scratch.  Concat-free (split weights), attention on
# the MXU, argmax + embedding gather via one-hot matmul.
# ----------------------------------------------------------------------------
def _speller_kernel(key_ref, val_ref, mbias_ref, emb_ref,
                    wx0e_ref, wx0c_ref, wh0_ref, b0_ref,
                    wx1_ref, wh1_ref, b1_ref,
                    wq_ref, bq_ref, wc_ref, bc_ref,
                    wcpq_ref, wcpc_ref, bcp_ref,
                    pred_ref, attn_ref,
                    ce_sc, ctx_sc, h0_sc, c0_sc, h1_sc, c1_sc):
    t = pl.program_id(0)
    B, E = ce_sc.shape
    P = ctx_sc.shape[-1]
    DH = h0_sc.shape[-1]
    DO = h1_sc.shape[-1]
    V = pred_ref.shape[-1]

    @pl.when(t == 0)
    def _():
        ce_sc[...] = jnp.broadcast_to(emb_ref[pl.ds(SOS_TOKEN, 1), :], (B, E))
        ctx_sc[...] = jnp.zeros_like(ctx_sc)
        h0_sc[...] = jnp.zeros_like(h0_sc)
        c0_sc[...] = jnp.zeros_like(c0_sc)
        h1_sc[...] = jnp.zeros_like(h1_sc)
        c1_sc[...] = jnp.zeros_like(c1_sc)

    def lstm_cell(gates, c_prev, Hs):
        i_g = jax.nn.sigmoid(gates[:, 0:Hs])
        f_g = jax.nn.sigmoid(gates[:, Hs:2 * Hs])
        g_g = jnp.tanh(gates[:, 2 * Hs:3 * Hs])
        o_g = jax.nn.sigmoid(gates[:, 3 * Hs:4 * Hs])
        c_new = f_g * c_prev + i_g * g_g
        return o_g * jnp.tanh(c_new), c_new

    # LSTMCell 0: input = [char_embed, context]  (split weights -> no concat)
    g0 = (jnp.dot(ce_sc[...], wx0e_ref[...], preferred_element_type=jnp.float32)
          + jnp.dot(ctx_sc[...], wx0c_ref[...], preferred_element_type=jnp.float32)
          + jnp.dot(h0_sc[...], wh0_ref[...], preferred_element_type=jnp.float32)
          + b0_ref[...])
    h0, c0 = lstm_cell(g0, c0_sc[...], DH)

    # LSTMCell 1
    g1 = (jnp.dot(h0, wx1_ref[...], preferred_element_type=jnp.float32)
          + jnp.dot(h1_sc[...], wh1_ref[...], preferred_element_type=jnp.float32)
          + b1_ref[...])
    h1, c1 = lstm_cell(g1, c1_sc[...], DO)

    # Attention: scores/context as MXU batched contractions.
    query = jnp.dot(h1, wq_ref[...], preferred_element_type=jnp.float32) + bq_ref[...]
    scores = jnp.einsum('bqp,btp->bqt', query[:, None, :], key_ref[...],
                        preferred_element_type=jnp.float32)[:, 0, :]
    scores = scores * (1.0 / math.sqrt(P)) + mbias_ref[...]
    m = jnp.max(scores, axis=1, keepdims=True)
    e = jnp.exp(scores - m)
    attn = e / jnp.sum(e, axis=1, keepdims=True)
    ctx = jnp.einsum('bqt,btp->bqp', attn[:, None, :], val_ref[...],
                     preferred_element_type=jnp.float32)[:, 0, :]
    ctx = jnp.dot(ctx, wc_ref[...], preferred_element_type=jnp.float32) + bc_ref[...]

    # char_prob([query, context])  (tied weights, split -> no concat)
    logits = (jnp.dot(query, wcpq_ref[...], preferred_element_type=jnp.float32)
              + jnp.dot(ctx, wcpc_ref[...], preferred_element_type=jnp.float32)
              + bcp_ref[...])

    pred_ref[0] = logits
    attn_ref[0] = attn

    # Greedy argmax -> next char embedding via one-hot matmul (in-kernel gather).
    idx = lax.broadcasted_iota(jnp.int32, (B, V), 1)
    is_max = logits == jnp.max(logits, axis=1, keepdims=True)
    first_max = jnp.min(jnp.where(is_max, idx, V), axis=1, keepdims=True)
    onehot = (idx == first_max).astype(jnp.float32)
    ce_sc[...] = jnp.dot(onehot, emb_ref[...], preferred_element_type=jnp.float32)
    ctx_sc[...] = ctx
    h0_sc[...] = h0
    c0_sc[...] = c0
    h1_sc[...] = h1
    c1_sc[...] = c1


def speller_forward(params, enc_out, enc_lens, max_steps):
    att = params["attention"]
    dec = params["decoder"]
    B, Tenc, F2 = enc_out.shape
    P = att["wq"].shape[1]
    DH = dec["wh0"].shape[0]
    DO = dec["wh1"].shape[0]
    V = dec["bcp"].shape[1]
    E = dec["embedding"].shape[1]

    # Fused key/value projection: one pass over the encoder output.
    wkv = jnp.concatenate([att["wk"], att["wv"]], axis=1)        # (2H, 2P)
    bkv = jnp.concatenate([att["bk"], att["bv"]], axis=1)        # (1, 2P)
    kv = linear(enc_out.reshape(B * Tenc, F2), wkv, bkv).reshape(B, Tenc, 2 * P)
    key_t = kv[:, :, :P]
    val_t = kv[:, :, P:]

    pad_mask = jnp.arange(Tenc)[None, :] >= enc_lens[:, None]
    # finite large-negative bias: identical softmax, no NaN for empty rows
    mbias = jnp.where(pad_mask, -1e30, 0.0).astype(jnp.float32)

    # Split concatenated-input weights so the kernel needs no lane concats.
    wx0 = dec["wx0"]          # (E + P, 4*DH)
    wcp = dec["wcp"]          # (2*P, V) == embedding.T (weight tying)
    operands = (key_t, val_t, mbias, dec["embedding"],
                wx0[:E], wx0[E:], dec["wh0"], dec["b0"],
                dec["wx1"], dec["wh1"], dec["b1"],
                att["wq"], att["bq"], att["wc"], att["bc"],
                wcp[:P], wcp[P:], dec["bcp"])

    def const_spec(a):
        nd = a.ndim
        return pl.BlockSpec(a.shape, lambda t, _nd=nd: (0,) * _nd)

    preds, attns = pl.pallas_call(
        _speller_kernel,
        out_shape=(jax.ShapeDtypeStruct((max_steps, B, V), jnp.float32),
                   jax.ShapeDtypeStruct((max_steps, B, Tenc), jnp.float32)),
        grid_spec=pltpu.PrefetchScalarGridSpec(
            num_scalar_prefetch=0,
            grid=(max_steps,),
            in_specs=[const_spec(a) for a in operands],
            out_specs=[
                pl.BlockSpec((1, B, V), lambda t: (t, 0, 0)),
                pl.BlockSpec((1, B, Tenc), lambda t: (t, 0, 0)),
            ],
            scratch_shapes=[
                pltpu.VMEM((B, E), jnp.float32),    # char embedding
                pltpu.VMEM((B, P), jnp.float32),    # context
                pltpu.VMEM((B, DH), jnp.float32),   # h0
                pltpu.VMEM((B, DH), jnp.float32),   # c0
                pltpu.VMEM((B, DO), jnp.float32),   # h1
                pltpu.VMEM((B, DO), jnp.float32),   # c1
            ],
        ),
        compiler_params=pltpu.CompilerParams(
            dimension_semantics=("arbitrary",)),
    )(*operands)

    predictions = jnp.transpose(preds, (1, 0, 2))    # (B, steps, vocab)
    attention_plot = attns[:, 0, :]                  # (steps, Tenc), batch item 0
    return predictions, attention_plot


# ----------------------------------------------------------------------------
# Listener (time-major throughout; one transpose in, one out).
# ----------------------------------------------------------------------------
def listener_forward(enc_p, x, lx):
    B, T_in, _ = x.shape
    # pad_packed after the base LSTM crops to max(lx).
    try:
        T1 = int(jnp.max(lx))
    except Exception:
        # TODO(synk): under jit lx is traced; fall back to the static padded
        # length (identical result whenever max(lx) == x.shape[1]).
        T1 = T_in
    lens = lx.astype(jnp.int32)

    h = jnp.transpose(x[:, :T1, :], (1, 0, 2))        # (T1, B, F) time-major
    h = bilstm_layer(enc_p["base"], h, lens)
    for name in ("pb1", "pb2", "pb3"):                # LockedDropout: no-op in eval
        T = h.shape[0]
        T2 = T // 2
        # trunc_reshape (time-major): pair adjacent timesteps along features.
        h2 = jnp.concatenate([h[0:2 * T2:2], h[1:2 * T2:2]], axis=-1)
        lens = jnp.minimum(lens, T2)                  # torch.clamp(lens, max=T//2)
        h = bilstm_layer(enc_p[name], h2, lens)
    return jnp.transpose(h, (1, 0, 2)), lens          # (B, Tenc, 2H)


def las_forward(params, x, lx, max_decode_steps=600):
    # TODO(synk): training branch (teacher forcing, label embeddings) not
    # implemented; this reproduces the eval forward pass.
    enc_out, enc_lens = listener_forward(params["encoder"], x, lx)
    return speller_forward(params, enc_out, enc_lens, max_decode_steps)


# ----------------------------------------------------------------------------
# Deterministic parameter initialization (synthetic, shapes from __init__).
# ----------------------------------------------------------------------------
def init_las_params(key, input_size, H, V, E, DH, DO, P):
    keys = iter(jax.random.split(key, 64))

    def u(shape, scale=0.1):
        return jax.random.uniform(next(keys), shape, jnp.float32, -scale, scale)

    def bilstm_p(I, Hs):
        # wx/b hold BOTH directions ([fwd 4H | bwd 4H] along the output dim);
        # wh is stacked per direction: (2, H, 4H).
        return dict(wx=u((I, 8 * Hs)), b=u((1, 8 * Hs)), wh=u((2, Hs, 4 * Hs)))

    encoder = dict(
        base=bilstm_p(input_size, H),
        pb1=bilstm_p(4 * H, H),
        pb2=bilstm_p(4 * H, H),
        pb3=bilstm_p(4 * H, H),
    )
    attention = dict(
        wk=u((2 * H, P)), bk=u((1, P)),
        wv=u((2 * H, P)), bv=u((1, P)),
        wq=u((DO, P)), bq=u((1, P)),
        wc=u((P, P)), bc=u((1, P)),
    )
    embedding = u((V, E)).at[EOS_TOKEN].set(0.0)      # padding_idx=EOS_TOKEN
    decoder = dict(
        embedding=embedding,
        wx0=u((E + P, 4 * DH)), wh0=u((DH, 4 * DH)), b0=u((1, 4 * DH)),
        wx1=u((DH, 4 * DO)), wh1=u((DO, 4 * DO)), b1=u((1, 4 * DO)),
        wcp=embedding.T,                              # char_prob.weight tied to embedding
        bcp=u((1, V)),
    )
    return dict(encoder=encoder, attention=attention, decoder=decoder)


if __name__ == "__main__":
    # Small shapes consistent with the module's constraints:
    #   embed_size == decoder_output_size + projection_size (weight tying)
    #   decoder_output_size == projection_size (char_prob input = query ⊕ context)
    input_size = 16
    encoder_hidden_size = 16
    projection_size = 16
    decoder_output_size = 16
    decoder_hidden_size = 32
    embed_size = decoder_output_size + projection_size   # 32
    vocab_size = 10
    B, T = 2, 32
    max_decode_steps = 12   # PyTorch eval uses 600; parameterized for the demo

    root = jax.random.PRNGKey(0)
    k_params, k_x = jax.random.split(root)
    params = init_las_params(k_params, input_size, encoder_hidden_size,
                             vocab_size, embed_size, decoder_hidden_size,
                             decoder_output_size, projection_size)

    x = jax.random.normal(k_x, (B, T, input_size), jnp.float32)
    lx = jnp.array([32, 3], dtype=jnp.int32)

    predictions, attention_plot = las_forward(params, x, lx, max_decode_steps)
    jax.block_until_ready((predictions, attention_plot))
    assert predictions.shape == (B, max_decode_steps, vocab_size)
    assert attention_plot.shape[0] == max_decode_steps
    print("KERNEL_OK")
</pallas_src>

<mosaic_0001>
module attributes {stable_mosaic.version = 11 : i64} {
  func.func @_linear_kernel(%arg0: i32, %arg1: memref<64x16xf32, #tpu.memory_space<vmem>>, %arg2: memref<16x128xf32, #tpu.memory_space<vmem>>, %arg3: memref<1x128xf32, #tpu.memory_space<vmem>>, %arg4: memref<64x128xf32, #tpu.memory_space<vmem>>) attributes {dimension_semantics = [#tpu.dimension_semantics<parallel>], iteration_bounds = array<i64: 1>, scalar_prefetch = 0 : i64, scratch_operands = 0 : i64, tpu.core_type = #tpu.core_type<tc>, window_params = [{transform_indices = @transform_0, window_bounds = array<i64: 64, 16>}, {pipeline_mode = #tpu.pipeline_mode<synchronous>, transform_indices = @transform_1, window_bounds = array<i64: 16, 128>}, {pipeline_mode = #tpu.pipeline_mode<synchronous>, transform_indices = @transform_2, window_bounds = array<i64: 1, 128>}, {transform_indices = @transform_3, window_bounds = array<i64: 64, 128>}]} {
    %c0 = arith.constant 0 : index
    %c0_0 = arith.constant 0 : index
    %0 = vector.load %arg1[%c0, %c0_0] : memref<64x16xf32, #tpu.memory_space<vmem>>, vector<64x16xf32>
    %c0_1 = arith.constant 0 : index
    %c0_2 = arith.constant 0 : index
    %1 = vector.load %arg2[%c0_1, %c0_2] : memref<16x128xf32, #tpu.memory_space<vmem>>, vector<16x128xf32>
    %cst = arith.constant dense<0.000000e+00> : vector<64x128xf32>
    %2 = tpu.matmul %0, %1, %cst {dimension_numbers = #tpu.dot_dimension_numbers<[1], [0], [0], [1], [0, 0, 1, 1], [], []>} : vector<64x16xf32>, vector<16x128xf32>, vector<64x128xf32> -> vector<64x128xf32>
    %c0_3 = arith.constant 0 : index
    %c0_4 = arith.constant 0 : index
    %3 = vector.load %arg3[%c0_3, %c0_4] : memref<1x128xf32, #tpu.memory_space<vmem>>, vector<1x128xf32>
    %4 = vector.broadcast %3 : vector<1x128xf32> to vector<64x128xf32>
    %5 = arith.addf %2, %4 : vector<64x128xf32>
    %c0_5 = arith.constant 0 : index
    %c0_6 = arith.constant 0 : index
    %6 = vector.load %arg4[%c0_5, %c0_6] : memref<64x128xf32, #tpu.memory_space<vmem>>, vector<64x128xf32>
    tpu.vector_store %arg4[%c0_5, %c0_6], %5 {strides = array<i32>} : memref<64x128xf32, #tpu.memory_space<vmem>>, vector<64x128xf32>,
    return
  }
  func.func @transform_0(%arg0: i32) -> (i32, i32) {
    %c0_i32 = arith.constant 0 : i32
    %c0_i32_0 = arith.constant 0 : i32
    return %arg0, %c0_i32 : i32, i32
  }
  func.func @transform_1(%arg0: i32) -> (i32, i32) {
    %c0_i32 = arith.constant 0 : i32
    %c0_i32_0 = arith.constant 0 : i32
    %c0_i32_1 = arith.constant 0 : i32
    return %c0_i32, %c0_i32_0 : i32, i32
  }
  func.func @transform_2(%arg0: i32) -> (i32, i32) {
    %c0_i32 = arith.constant 0 : i32
    %c0_i32_0 = arith.constant 0 : i32
    %c0_i32_1 = arith.constant 0 : i32
    return %c0_i32, %c0_i32_0 : i32, i32
  }
  func.func @transform_3(%arg0: i32) -> (i32, i32) {
    %c0_i32 = arith.constant 0 : i32
    %c0_i32_0 = arith.constant 0 : i32
    return %arg0, %c0_i32 : i32, i32
  }
}

</mosaic_0001>

<bundles_post_ra>
// kernel: tpu_custom_call.1
= control target key start
LH: loop header
LB: loop body
LE: loop exit
PB: predicated region body
PF: predicated region fallthrough
CT: control target
= control target key end

     0   :  { %vm29_vm0 = vcmask 130048   ;;  %s232_s0 = inlined_call_operand.vmem [shape: f32[64,16], index: 0, kind: input, shape index: {}]   ;;  %s233_s1 = inlined_call_operand.vmem [shape: f32[16,128], index: 1, kind: input, shape index: {}]   ;;  %s234_s2 = inlined_call_operand.vmem [shape: f32[1,128], index: 2, kind: input, shape index: {}]   ;;  %s235_s3 = inlined_call_operand.hbm [shape: f32[64,128], index: 3, kind: output, shape index: {}]  }
   0x1   :  { %v24_v0 = vld [vmem:[%s233_s1 + $0x8] sm:$0xff]  ;;  %v23_v1 = vld [vmem:[%s233_s1] sm:$0xff]  ;;  %v21_v3 = vld [vmem:[%s232_s0 + $0x30] sm:$0xff] }
   0x2   :  { %130 = vmatpush.msra.mxu2 %v24_v0  ;;  %131 = vmatpush.msra.mxu3 %v24_v0  ;;  %v19_v2 = vld [vmem:[%s232_s0 + $0x20] sm:$0xff]  ;;  %v17_v5 = vld [vmem:[%s232_s0 + $0x10] sm:$0xff] }
   0x3   :  { %68 = vmatpush.msra.mxu0 %v24_v0  ;;  %129 = vmatpush.msra.mxu1 %v24_v0  ;;  %v15_v4 = vld [vmem:[%s232_s0] sm:$0xff] }
   0x4   :  { %133 = vmatpush.msra.mxu2 %v23_v1  ;;  %134 = vmatpush.msra.mxu3 %v23_v1 }
   0x5   :  { %125 = vmatmul.msk.f32.vlgmr.msra.gmra.mxu2 %vm29_vm0, %v19_v2  ;;  %127 = vmatmul.msk.f32.vlgmr.msra.gmra.mxu3 %vm29_vm0, %v21_v3 }
   0x6   :  { %8 = vsyncpa [#allocation3], 0  ;;  %69 = vmatpush.msra.mxu0 %v23_v1  ;;  %132 = vmatpush.msra.mxu1 %v23_v1  ;;  %v20_v6 = vld [vmem:[%s232_s0 + $0x28] sm:$0xff]  ;;  %v22_v7 = vld [vmem:[%s232_s0 + $0x38] sm:$0xff]  ;;  %s109_s8 = sshll.u32 %s235_s3, 4  ;;  %s166_s9 = smov 128   ;;  %s110_s8 = int_to_ptr.hbm [resolvable:$true] %s109_s8 }
   0x7   :  { %121 = vmatmul.msk.f32.vlgmr.msra.gmra.mxu0 %vm29_vm0, %v15_v4  ;;  %123 = vmatmul.msk.f32.vlgmr.msra.gmra.mxu1 %vm29_vm0, %v17_v5  ;;  %v16_v8 = vld [vmem:[%s232_s0 + $0x8] sm:$0xff]  ;;  %v18_v9 = vld [vmem:[%s232_s0 + $0x18] sm:$0xff]  ;;  %v138_v10 = vld [vmem:[%s234_s2] ss:$0 sm:$0xff]  ;;  %s165_s0 = smov [#allocation2]   ;;  %s167_s10 = smov 8  }
   0x8   :  { %s107_s6 = sshll.u32 %s165_s0, 4  ;;  %s108_s6 = int_to_ptr.vmem [resolvable:$true] %s107_s6 }
   0xd   :  { %126 = vmatmul.msk.f32.gmra.mxu2 %vm29_vm0, %v20_v6  ;;  %128 = vmatmul.msk.f32.gmra.mxu3 %vm29_vm0, %v22_v7 }
   0xf   :  { %122 = vmatmul.msk.f32.gmra.mxu0 %vm29_vm0, %v16_v8  ;;  %124 = vmatmul.msk.f32.gmra.mxu1 %vm29_vm0, %v18_v9 }
  0x84   :  { %v71_v11 = vpop.f32.mrf.mxu0  ;;  %v77_v12 = vpop.f32.mrf.mxu1 }
  0x85   :  { %v72_v13 = vadd.f32 %v138_v10, %v71_v11  ;;  %v78_v14 = vadd.f32 %v138_v10, %v77_v12 }
  0x87   :  { %95 = vst [vmem:[#allocation2] sm:$0xff] %v72_v13 }
  0x88   :  { %97 = vst [vmem:[#allocation2 + $0x10] sm:$0xff] %v78_v14  ;;  %v83_v15 = vpop.f32.mrf.mxu2  ;;  %v89_v16 = vpop.f32.mrf.mxu3 }
  0x89   :  { %v84_v17 = vadd.f32 %v138_v10, %v83_v15  ;;  %v90_v18 = vadd.f32 %v138_v10, %v89_v16 }
  0x8b   :  { %99 = vst [vmem:[#allocation2 + $0x20] sm:$0xff] %v84_v17 }
  0x8c   :  { %101 = vst [vmem:[#allocation2 + $0x30] sm:$0xff] %v90_v18  ;;  %v74_v19 = vpop.f32.mrf.mxu0  ;;  %v80_v20 = vpop.f32.mrf.mxu1 }
  0x8d   :  { %v75_v21 = vadd.f32 %v138_v10, %v74_v19  ;;  %v81_v22 = vadd.f32 %v138_v10, %v80_v20 }
  0x8f   :  { %96 = vst [vmem:[#allocation2 + $0x8] sm:$0xff] %v75_v21 }
  0x90   :  { %98 = vst [vmem:[#allocation2 + $0x18] sm:$0xff] %v81_v22  ;;  %v86_v23 = vpop.f32.mrf.mxu2  ;;  %v92_v24 = vpop.f32.mrf.mxu3 }
  0x91   :  { %v87_v25 = vadd.f32 %v138_v10, %v86_v23  ;;  %v93_v26 = vadd.f32 %v138_v10, %v92_v24 }
  0x93   :  { %100 = vst [vmem:[#allocation2 + $0x28] sm:$0xff] %v87_v25 }
  0x94   :  { %102 = vst [vmem:[#allocation2 + $0x38] sm:$0xff] %v93_v26 }
  0x95   :  { %115 = dma.vmem_to_hbm [thread:$0]  %s108_s6, 1024, %s110_s8, [#allocation3], %s166_s9, %s166_s9, %s167_s10  }
  0x96   :  { %163 = dma.done.wait [#allocation3], 1024  }
  0x97   :  { %164 = vsyncadd [#allocation3], 4294966272 }
  0x98   :  { %120 = vsyncpa [#allocation3], 1 }

</bundles_post_ra>
